<compile_context>
chip_gen: v6e
topology: v6e:2x2x1
jax: 0.10.0
libtpu: 0.0.40
codegen_flags: <defaults>
</compile_context>

<pallas_src>
import functools

import jax
import jax.numpy as jnp
from jax.experimental import pallas as pl
from jax.experimental.pallas import tpu as pltpu


def _round_up(n, m):
    return ((n + m - 1) // m) * m


def _rnn_cell_kernel(xh_ref, w_ref, b_ref, hid_ref, out_ref, *, h_pad):
    # Single fused MXU dot over K = I + H, f32 accumulation, plus bias add.
    pre = (
        jnp.dot(xh_ref[...], w_ref[...], preferred_element_type=jnp.float32)
        + b_ref[...]
    )
    # Columns are [hidden block (h_pad lanes, 128-aligned) | output block];
    # both slices below are lane-aligned -> unmasked lane-dense stores.
    hid_ref[...] = jax.nn.sigmoid(pre[:, :h_pad]).astype(hid_ref.dtype)
    out_ref[...] = pre[:, h_pad:].astype(out_ref.dtype)


def fuse_params(params):
    """One-time weight plumbing (do this at param creation/update, not per step).

    Returns a dict with:
      w: (I+H, h_pad + o_pad)  fused, K-major, columns = [hidden | output]
      b: (1,   h_pad + o_pad)  fused bias
    where h_pad/o_pad are the hidden/output widths rounded up to 128 lanes.
    """
    w_h, b_h = params["in2hidden_w"], params["in2hidden_b"]   # (H, I+H), (H,)
    w_o, b_o = params["in2output_w"], params["in2output_b"]   # (O, I+H), (O,)
    H, K = w_h.shape
    O = w_o.shape[0]
    h_pad = _round_up(H, 128)
    o_pad = _round_up(O, 128)
    n_pad = h_pad + o_pad

    w = jnp.zeros((K, n_pad), dtype=jnp.float32)
    w = w.at[:, :H].set(w_h.T)
    w = w.at[:, h_pad:h_pad + O].set(w_o.T)

    b = jnp.zeros((1, n_pad), dtype=jnp.float32)
    b = b.at[0, :H].set(b_h)
    b = b.at[0, h_pad:h_pad + O].set(b_o)

    return {"w": w, "b": b, "H": H, "O": O, "K": K,
            "h_pad": h_pad, "o_pad": o_pad}


def custom_rnn_forward(x, hidden_state, fused):
    """Forward pass of CustomRNN (single step).

    x:            (B, input_size)   float32
    hidden_state: (B, hidden_size)  float32
    fused:        output of fuse_params()
    returns (output (B, output_size), hidden (B, hidden_size))
    """
    B, I = x.shape
    H, O = fused["H"], fused["O"]
    K, h_pad, o_pad = fused["K"], fused["h_pad"], fused["o_pad"]
    assert I + H == K, "input/hidden sizes inconsistent with fused params"

    b_pad = _round_up(B, 8)

    # Wrapper-side [x | h] concat + sublane pad of the batch. (Cheap: one
    # (b_pad, K) slab; lets the kernel do a single K=I+H dot.)
    xh = jnp.concatenate([x, hidden_state], axis=1)          # (B, I+H)
    xh = jnp.pad(xh, ((0, b_pad - B), (0, 0)))               # (b_pad, I+H)

    kernel = functools.partial(_rnn_cell_kernel, h_pad=h_pad)

    n_pad = h_pad + o_pad
    cost = pl.CostEstimate(
        flops=2 * b_pad * K * n_pad,
        transcendentals=b_pad * h_pad,
        bytes_accessed=4 * (xh.size + fused["w"].size + fused["b"].size
                            + b_pad * n_pad),
    )

    hid_slab, out_slab = pl.pallas_call(
        kernel,
        out_shape=(jax.ShapeDtypeStruct((b_pad, h_pad), x.dtype),
                   jax.ShapeDtypeStruct((b_pad, o_pad), x.dtype)),
        in_specs=[pl.BlockSpec(memory_space=pltpu.VMEM)] * 3,
        out_specs=(pl.BlockSpec(memory_space=pltpu.VMEM),
                   pl.BlockSpec(memory_space=pltpu.VMEM)),
        cost_estimate=cost,
    )(xh, fused["w"], fused["b"])

    output = out_slab[:B, :O]
    hidden = hid_slab[:B, :H]
    return output, hidden


def init_params(key, input_size, hidden_size, output_size):
    """Deterministic parameter init (Kaiming-uniform-like, as nn.Linear does)."""
    k1, k2, k3, k4 = jax.random.split(key, 4)
    fan_in = input_size + hidden_size
    bound = 1.0 / jnp.sqrt(fan_in)
    return {
        "in2hidden_w": jax.random.uniform(k1, (hidden_size, fan_in),
                                          minval=-bound, maxval=bound,
                                          dtype=jnp.float32),
        "in2hidden_b": jax.random.uniform(k2, (hidden_size,),
                                          minval=-bound, maxval=bound,
                                          dtype=jnp.float32),
        "in2output_w": jax.random.uniform(k3, (output_size, fan_in),
                                          minval=-bound, maxval=bound,
                                          dtype=jnp.float32),
        "in2output_b": jax.random.uniform(k4, (output_size,),
                                          minval=-bound, maxval=bound,
                                          dtype=jnp.float32),
    }


if __name__ == "__main__":
    input_size, hidden_size, output_size = 16, 32, 8
    batch = 2

    key = jax.random.PRNGKey(0)
    kp, kx, kh = jax.random.split(key, 3)

    params = init_params(kp, input_size, hidden_size, output_size)
    fused = fuse_params(params)   # one-time weight fusion, outside the hot path

    x = jax.random.normal(kx, (batch, input_size), dtype=jnp.float32)
    h0 = jax.random.normal(kh, (batch, hidden_size), dtype=jnp.float32)

    output, hidden = custom_rnn_forward(x, h0, fused)
    jax.block_until_ready((output, hidden))

    # Pure-JAX reference check (same math as the PyTorch module).
    combined = jnp.concatenate([x, h0], axis=1)
    ref_hidden = jax.nn.sigmoid(combined @ params["in2hidden_w"].T + params["in2hidden_b"])
    ref_output = combined @ params["in2output_w"].T + params["in2output_b"]
    assert output.shape == (batch, output_size)
    assert hidden.shape == (batch, hidden_size)
    assert jnp.allclose(output, ref_output, atol=1e-5), "output mismatch"
    assert jnp.allclose(hidden, ref_hidden, atol=1e-5), "hidden mismatch"

    print("KERNEL_OK")
</pallas_src>

<mosaic_0001>
module attributes {stable_mosaic.version = 11 : i64} {
  func.func @_rnn_cell_kernel(%arg0: memref<8x48xf32, #tpu.memory_space<vmem>>, %arg1: memref<48x256xf32, #tpu.memory_space<vmem>>, %arg2: memref<1x256xf32, #tpu.memory_space<vmem>>, %arg3: memref<8x128xf32, #tpu.memory_space<vmem>>, %arg4: memref<8x128xf32, #tpu.memory_space<vmem>>) attributes {dimension_semantics = [], scalar_prefetch = 0 : i64, scratch_operands = 0 : i64, tpu.core_type = #tpu.core_type<tc>} {
    %c0 = arith.constant 0 : index
    %c0_0 = arith.constant 0 : index
    %0 = vector.load %arg0[%c0, %c0_0] : memref<8x48xf32, #tpu.memory_space<vmem>>, vector<8x48xf32>
    %c0_1 = arith.constant 0 : index
    %c0_2 = arith.constant 0 : index
    %1 = vector.load %arg1[%c0_1, %c0_2] : memref<48x256xf32, #tpu.memory_space<vmem>>, vector<48x256xf32>
    %cst = arith.constant dense<0.000000e+00> : vector<8x256xf32>
    %2 = tpu.matmul %0, %1, %cst {dimension_numbers = #tpu.dot_dimension_numbers<[1], [0], [0], [1], [0, 0, 1, 1], [], []>} : vector<8x48xf32>, vector<48x256xf32>, vector<8x256xf32> -> vector<8x256xf32>
    %c0_3 = arith.constant 0 : index
    %c0_4 = arith.constant 0 : index
    %3 = vector.load %arg2[%c0_3, %c0_4] : memref<1x256xf32, #tpu.memory_space<vmem>>, vector<1x256xf32>
    %4 = vector.broadcast %3 : vector<1x256xf32> to vector<8x256xf32>
    %5 = arith.addf %2, %4 : vector<8x256xf32>
    %6 = vector.extract_strided_slice %5 {offsets = [0, 0], sizes = [8, 128], strides = [1, 1]} : vector<8x256xf32> to vector<8x128xf32>
    %7 = arith.negf %6 : vector<8x128xf32>
    %8 = math.exp %7 : vector<8x128xf32>
    %cst_5 = arith.constant 1.000000e+00 : f32
    %9 = vector.broadcast %cst_5 : f32 to vector<8x128xf32>
    %10 = arith.addf %9, %8 : vector<8x128xf32>
    %11 = arith.divf %9, %10 : vector<8x128xf32>
    %c0_6 = arith.constant 0 : index
    %c0_7 = arith.constant 0 : index
    %12 = vector.load %arg3[%c0_6, %c0_7] : memref<8x128xf32, #tpu.memory_space<vmem>>, vector<8x128xf32>
    tpu.vector_store %arg3[%c0_6, %c0_7], %11 {strides = array<i32>} : memref<8x128xf32, #tpu.memory_space<vmem>>, vector<8x128xf32>,
    %13 = vector.extract_strided_slice %5 {offsets = [0, 128], sizes = [8, 128], strides = [1, 1]} : vector<8x256xf32> to vector<8x128xf32>
    %c0_8 = arith.constant 0 : index
    %c0_9 = arith.constant 0 : index
    %14 = vector.load %arg4[%c0_8, %c0_9] : memref<8x128xf32, #tpu.memory_space<vmem>>, vector<8x128xf32>
    tpu.vector_store %arg4[%c0_8, %c0_9], %13 {strides = array<i32>} : memref<8x128xf32, #tpu.memory_space<vmem>>, vector<8x128xf32>,
    return
  }
}

</mosaic_0001>

<bundles_post_ra>
// kernel: tpu_custom_call.1
= control target key start
LH: loop header
LB: loop body
LE: loop exit
PB: predicated region body
PF: predicated region fallthrough
CT: control target
= control target key end

     0   :  { %10 = vsyncpa [#allocation3], 0  ;;  %s330_s0 = inlined_call_operand.hbm [shape: f32[8,48], index: 0, kind: input, shape index: {}]   ;;  %s331_s1 = inlined_call_operand.hbm [shape: f32[48,256], index: 1, kind: input, shape index: {}]   ;;  %s332_s2 = inlined_call_operand.vmem [shape: f32[1,256], index: 2, kind: input, shape index: {}]   ;;  %s333_s3 = inlined_call_operand.hbm [shape: f32[8,128], index: 3, kind: output, shape index: {0}]   ;;  %s334_s4 = inlined_call_operand.hbm [shape: f32[8,128], index: 4, kind: output, shape index: {1}]  }
   0x1   :  { %11 = vsyncpa [#allocation6], 0 }
   0x2   :  { %12 = vsyncpa [#allocation4], 0 }
   0x3   :  { %13 = vsyncpa [#allocation9], 0  ;;  %s283_s15 = smov [#allocation2]   ;;  %s284_s17 = smov [#allocation5]  }
   0x4   :  { %s20_s16 = sshll.u32 %s283_s15, 4  ;;  %s29_s18 = sshll.u32 %s284_s17, 4  ;;  %s21_s16 = int_to_ptr.vmem [resolvable:$true] %s20_s16  ;;  %s30_s18 = int_to_ptr.vmem [resolvable:$true] %s29_s18 }
   0x5   :  { %s203_s19 = scalar_lea.vmem %s21_s16, 128  ;;  %p208_p1 = scmp.lt.s32.totalorder %s21_s16, %s21_s16 }
   0x6   :  { %p204_p0 = scmp.ne.s32.totalorder %s21_s16, %s203_s19  ;;  %p209_p2 = scmp.lt.s32.totalorder %s203_s19, %s203_s19 }
   0x8   :  { %p210_p3 = por %p209_p2, %p208_p1 }
   0xa   :  { %p211_p4 = pnand %p210_p3, %p204_p0 }
   0xc   :  { %214 = shalt.err (!%p211_p4)
}
   0xd   :  { %23 = dma.hbm_to_vmem [thread:$0]  %s330_s0, 128, %s21_s16, [#allocation3]  }
   0xe   :  { %s223_s22 = scalar_lea.vmem %s30_s18, 1536  ;;  %p228_p6 = scmp.lt.s32.totalorder %s30_s18, %s30_s18 }
   0xf   :  { %p224_p5 = scmp.ne.s32.totalorder %s30_s18, %s223_s22  ;;  %p229_p7 = scmp.lt.s32.totalorder %s223_s22, %s223_s22 }
  0x11   :  { %p230_p8 = por %p229_p7, %p228_p6 }
  0x13   :  { %p231_p9 = pnand %p230_p8, %p224_p5 }
  0x15   :  { %234 = shalt.err (!%p231_p9)
}
  0x16   :  { %s285_s23 = smov 256   ;;  %s286_s24 = smov 16  }
  0x17   :  { %35 = dma.hbm_to_vmem [thread:$0]  %s331_s1, 1536, %s30_s18, [#allocation6], %s285_s23, %s285_s23, %s286_s24  }
  0x18   :  { %275 = dma.done.wait [#allocation3], 128  }
  0x19   :  { %276 = vsyncadd [#allocation3], 4294967168 }
  0x1a   :  { %277 = dma.done.wait [#allocation6], 1536  }
  0x1b   :  { %278 = vsyncadd [#allocation6], 4294965760  ;;  %v287_v0 = vmov 0.0   ;;  %v56_v1 = vld [vmem:[#allocation5 + $0x58] sm:$0xff]  ;;  %v55_v2 = vld [vmem:[#allocation5 + $0x50] sm:$0xff]  ;;  %vm69_vm0 = vcmask 392192   ;;  %v59_v14 = vlaneseq }
  0x1c   :  { %137 = vmatprep.mubr.f32.mxu0 %v287_v0  ;;  %v54_v3 = vld [vmem:[#allocation5 + $0x48] sm:$0xff]  ;;  %93 = vmatprep.subr.mxu0 %v56_v1  ;;  %v53_v4 = vld [vmem:[#allocation5 + $0x40] sm:$0xff]  ;;  %v52_v5 = vld [vmem:[#allocation5 + $0x38] sm:$0xff]  ;;  %s288_s27 = smov [#allocation8]  }
  0x1d   :  { %94 = vmatpush1.msra.mxu0 %v55_v2  ;;  %v51_v6 = vld [vmem:[#allocation5 + $0x30] sm:$0xff]  ;;  %v50_v7 = vld [vmem:[#allocation5 + $0x28] sm:$0xff]  ;;  %v49_v8 = vld [vmem:[#allocation5 + $0x20] sm:$0xff]  ;;  %v60_v15 = vshrl.u32 %v59_v14, 7  ;;  %s168_s28 = sshll.u32 %s288_s27, 4  ;;  %s169_s28 = int_to_ptr.vmem [resolvable:$true] %s168_s28 }
  0x1e   :  { %95 = vmatprep.subr.mxu0 %v54_v3  ;;  %v48_v9 = vld [vmem:[#allocation5 + $0x18] sm:$0xff]  ;;  %v47_v10 = vld [vmem:[#allocation5 + $0x10] sm:$0xff]  ;;  %v46_v11 = vld [vmem:[#allocation5 + $0x8] sm:$0xff]  ;;  %s235_s29 = scalar_lea.vmem %s169_s28, 128  ;;  %p240_p11 = scmp.lt.s32.totalorder %s169_s28, %s169_s28 }
  0x1f   :  { %96 = vmatpush1.msra.mxu0 %v53_v4  ;;  %v45_v12 = vld [vmem:[#allocation5] sm:$0xff]  ;;  %v44_v13 = vld [vmem:[#allocation2] sm:$0xff]  ;;  %v61_v16 = vsub.s32 0, %v60_v15  ;;  %v65_v18 = vsub.s32 1, %v60_v15  ;;  %p236_p10 = scmp.ne.s32.totalorder %s169_s28, %s235_s29  ;;  %p241_p12 = scmp.lt.s32.totalorder %s235_s29, %s235_s29 }
  0x20   :  { %97 = vmatprep.subr.mxu0 %v52_v5  ;;  %v57_v17 = vld [vmem:[%s332_s2] sm:$0x3] }
  0x21   :  { %98 = vmatpush1.msra.mxu0 %v51_v6  ;;  %v62_v19 = vrot.slane %v57_v17, %v61_v16  ;;  %v66_v20 = vrot.slane %v57_v17, %v65_v18  ;;  %p242_p13 = por %p241_p12, %p240_p11 }
  0x22   :  { %99 = vmatprep.subr.mxu0 %v50_v7 }
  0x23   :  { %100 = vmatpush1.msra.mxu0 %v49_v8  ;;  %p243_p0 = pnand %p242_p13, %p236_p10 }
  0x24   :  { %101 = vmatprep.subr.mxu0 %v48_v9 }
  0x25   :  { %102 = vmatpush1.msra.mxu0 %v47_v10 }
  0x26   :  { %103 = vmatprep.subr.mxu0 %v46_v11 }
  0x27   :  { %104 = vmatpush1.msra.mxu0 %v45_v12 }
  0x28   :  { %182 = vmatmul.mubr.msk.f32.vlgmr.msra.gmra.mxu0 %vm69_vm0, %v44_v13 }
  0xe8   :  { %v139_v21 = vpop.f32.mrf.mxu0 }
  0xe9   :  { %v140_v22 = vadd.f32 %v139_v21, %v62_v19 }
  0xea   :  { %v141_v23 = vpop.f32.mrf.mxu0 }
  0xeb   :  { %v183_v24 = vmul.f32 -1.442695, %v140_v22  ;;  %v142_v25 = vadd.f32 %v141_v23, %v66_v20 }
  0xed   :  { %191 = vpow2.f32 %v183_v24  ;;  %151 = vst [vmem:[#allocation8] sm:$0xff] %v142_v25 }
  0xee   :  { %246 = shalt.err (!%p243_p0)
}
  0xef   :  { %171 = dma.vmem_to_hbm [thread:$0]  %s169_s28, 128, %s334_s4, [#allocation9]  }
  0xf0   :  { %s289_s5 = smov [#allocation7]  }
  0xf1   :  { %s158_s6 = sshll.u32 %s289_s5, 4  ;;  %s159_s6 = int_to_ptr.vmem [resolvable:$true] %s158_s6 }
  0xf2   :  { %s255_s7 = scalar_lea.vmem %s159_s6, 128  ;;  %p260_p2 = scmp.lt.s32.totalorder %s159_s6, %s159_s6 }
  0xf3   :  { %p256_p1 = scmp.ne.s32.totalorder %s159_s6, %s255_s7  ;;  %p261_p3 = scmp.lt.s32.totalorder %s255_s7, %s255_s7 }
  0xf5   :  { %p262_p4 = por %p261_p3, %p260_p2 }
  0xf7   :  { %p263_p5 = pnand %p262_p4, %p256_p1 }
  0xfa   :  { %v192_v26 = vpop.eup %191 }
  0xfb   :  { %v147_v27 = vadd.f32 1.0, %v192_v26 }
  0xfd   :  { %193 = vrcp.f32 %v147_v27 }
 0x10a   :  { %v194_v28 = vpop.eup %193 }
 0x10b   :  { %150 = vst [vmem:[#allocation7] sm:$0xff] %v194_v28 }
 0x10c   :  { %266 = shalt.err (!%p263_p5)
}
 0x10d   :  { %161 = dma.vmem_to_hbm [thread:$0]  %s159_s6, 128, %s333_s3, [#allocation4]  }
 0x10e   :  { %279 = dma.done.wait [#allocation4], 128  }
 0x10f   :  { %280 = vsyncadd [#allocation4], 4294967168 }
 0x110   :  { %281 = dma.done.wait [#allocation9], 128  }
 0x111   :  { %282 = vsyncadd [#allocation9], 4294967168 }
 0x112   :  { %178 = vsyncpa [#allocation3], 1 }
 0x113   :  { %179 = vsyncpa [#allocation6], 1 }
 0x114   :  { %180 = vsyncpa [#allocation4], 1 }
 0x115   :  { %181 = vsyncpa [#allocation9], 1 }

</bundles_post_ra>
